<compile_context>
chip_gen: v5e
topology: v5e:2x2
jax: 0.10.0
libtpu: 0.0.40
codegen_flags: <defaults>
</compile_context>

<pallas_src>
import functools
import math

import jax
import jax.numpy as jnp
from jax import lax
from jax.experimental import pallas as pl
from jax.experimental.pallas import tpu as pltpu

BN_EPS = 1e-5


def _gelu_exact(x):
    # nn.GELU default = exact erf formulation.
    return 0.5 * x * (1.0 + lax.erf(x * 0.7071067811865476))


def _round_up(n, m):
    return ((n + m - 1) // m) * m


def _pick_hw_tile(hw_pad, c, itemsize, vmem_budget=8 * 1024 * 1024):
    """Largest 128-multiple divisor of hw_pad whose double-buffered [C, tile] input
    footprint stays under the budget (bigger tiles amortize per-step overhead)."""
    cap_lanes = max(128, (vmem_budget // max(1, 2 * c * itemsize)) // 128 * 128)
    max_lanes = min(2048, cap_lanes)
    n = hw_pad // 128
    best = 1
    for d in range(1, max_lanes // 128 + 1):
        if n % d == 0:
            best = d
    return 128 * best


# ---------------------------------------------------------------------------
# KernelAttention: pooled -> 1x1 conv (BN folded) -> GELU -> 1x1 conv -> sigmoid
# ---------------------------------------------------------------------------
def _attention_kernel(x_ref, w1_ref, b1_ref, w2_ref, b2_ref, o_ref, acc_ref, *, inv_hw):
    k = pl.program_id(1)

    @pl.when(k == 0)
    def _init():
        acc_ref[...] = jnp.zeros_like(acc_ref)

    # Partial spatial sum for this tile; f32 accumulator persists across the hw axis.
    # (Cross-lane reduce goes to the XLU slot; the kernel is HBM-read bound.)
    acc_ref[...] += jnp.sum(x_ref[...].astype(jnp.float32), axis=-1)

    @pl.when(k == pl.num_programs(1) - 1)
    def _epilogue():
        pooled = acc_ref[...] * inv_hw                                    # [1, C]
        h = jnp.dot(pooled, w1_ref[...], preferred_element_type=jnp.float32)
        h = _gelu_exact(h + b1_ref[...])                                  # conv1 + folded BN
        out = jnp.dot(h, w2_ref[...], preferred_element_type=jnp.float32) + b2_ref[...]
        o_ref[...] = jax.nn.sigmoid(out)[:, None, :].astype(o_ref.dtype)  # [1, 1, K]


def kernel_attention(x, p):
    """x: [B, C, H, W]; p: KernelAttention params. Returns sigmoid gates [B, K]."""
    B, C, H, W = x.shape
    HW = H * W
    hw_pad = _round_up(HW, 128)
    x_flat = x.reshape(B, C, HW)
    if hw_pad != HW:
        # Zeros are neutral to the sum; the epilogue divides by the true H*W.
        x_flat = jnp.pad(x_flat, ((0, 0), (0, 0), (0, hw_pad - HW)))
    hw_tile = _pick_hw_tile(hw_pad, C, x.dtype.itemsize)
    n_hw = hw_pad // hw_tile

    mid = p["w1"].shape[0]
    K = p["w2"].shape[0]

    # Host-side (one-time): fold eval-mode BN into conv1, pre-transpose weights.
    scale = p["bn_gamma"] / jnp.sqrt(p["bn_var"] + BN_EPS)                 # [mid]
    w1f = (p["w1"] * scale[:, None]).T.astype(jnp.float32)                 # [C, mid]
    b1f = (p["bn_beta"] - p["bn_mean"] * scale)[None, :].astype(jnp.float32)  # [1, mid]
    w2t = p["w2"].T.astype(jnp.float32)                                    # [mid, K]
    b2 = p["b2"][None, :].astype(jnp.float32)                              # [1, K]

    kern = functools.partial(_attention_kernel, inv_hw=1.0 / float(HW))
    cost = pl.CostEstimate(
        flops=int(B * C * hw_pad + 2 * B * (C * mid + mid * K)),
        transcendentals=int(B * (mid + K)),
        bytes_accessed=int(4 * (x_flat.size + w1f.size + b1f.size + w2t.size + b2.size + B * K)),
    )

    out3 = pl.pallas_call(
        kern,
        out_shape=jax.ShapeDtypeStruct((B, 1, K), x.dtype),
        grid=(B, n_hw),
        in_specs=[
            pl.BlockSpec((1, C, hw_tile), lambda b, k: (b, 0, k)),
            pl.BlockSpec((C, mid), lambda b, k: (0, 0)),
            pl.BlockSpec((1, mid), lambda b, k: (0, 0)),
            pl.BlockSpec((mid, K), lambda b, k: (0, 0)),
            pl.BlockSpec((1, K), lambda b, k: (0, 0)),
        ],
        out_specs=pl.BlockSpec((1, 1, K), lambda b, k: (b, 0, 0)),
        scratch_shapes=[pltpu.VMEM((1, C), jnp.float32)],
        compiler_params=pltpu.CompilerParams(
            dimension_semantics=("parallel", "arbitrary"),
            vmem_limit_bytes=64 * 1024 * 1024,
        ),
        cost_estimate=cost,
    )(x_flat, w1f, b1f, w2t, b2)
    return out3[:, 0, :]


# ---------------------------------------------------------------------------
# KernelAggregation: per-sample weight/bias aggregation + conv2d (stride=1, groups=1)
# ---------------------------------------------------------------------------
def _aggregation_kernel(att_ref, w_ref, bt_ref, x_ref, o_ref, *, taps, num_kernels):
    b = pl.program_id(0)
    cout, lout = o_ref.shape

    # Per-sample kernel aggregation: w_b = sum_k attention[b, k] * weight[k]
    # (K is tiny; scalar gates live in SMEM, broadcast-multiplies run on the VPU.)
    w_all = w_ref[...].astype(jnp.float32)                 # [K, kh*kw, Cout, Cin]
    bt = bt_ref[...].astype(jnp.float32)                   # [Cout, K]
    a0 = att_ref[b * num_kernels]
    w_b = a0 * w_all[0]
    b_b = a0 * bt[:, 0:1]
    for k in range(1, num_kernels):
        a_k = att_ref[b * num_kernels + k]
        w_b = w_b + a_k * w_all[k]
        b_b = b_b + a_k * bt[:, k:k + 1]                   # [Cout, 1]

    # Conv as kh*kw shifted matmuls over the flattened spatial axis (lane-dense).
    acc = jnp.zeros((cout, lout), jnp.float32)
    for t, off in enumerate(taps):
        xs = x_ref[:, pl.ds(off, lout)].astype(jnp.float32)   # [Cin, lout]
        acc = acc + jnp.dot(w_b[t], xs, preferred_element_type=jnp.float32)
    o_ref[...] = (acc + b_b).astype(o_ref.dtype)


def kernel_aggregation(x, attention, weight, bias, *, stride=1, padding=0, dilation=1, groups=1):
    """x: [B,Cin,H,W]; attention: [B,K]; weight: [K,Cout,Cin,kh,kw]; bias: [K,Cout]."""
    if stride != 1 or groups != 1:
        # TODO(synk): strided / grouped dynamic conv is not implemented in the Pallas path.
        raise NotImplementedError("Pallas aggregation kernel supports stride=1, groups=1.")
    B, Cin, H, W = x.shape
    K, Cout, _, kh, kw = weight.shape
    Hp, Wp = H + 2 * padding, W + 2 * padding
    Ho = Hp - dilation * (kh - 1)
    Wo = Wp - dilation * (kw - 1)
    lout = Ho * Wp                                          # valid output columns per row: [:Wo]
    lout_pad = _round_up(lout, 128)                         # lane-dense (unmasked) output stores
    max_tap = dilation * (kh - 1) * Wp + dilation * (kw - 1)
    lin = _round_up(max_tap + lout_pad, 128)                # zero tail keeps tap slices in-bounds

    xp = jnp.pad(x, ((0, 0), (0, 0), (padding, padding), (padding, padding)))
    x_flat = xp.reshape(B, Cin, Hp * Wp)
    x_flat = jnp.pad(x_flat, ((0, 0), (0, 0), (0, lin - Hp * Wp)))

    # Host-side one-time relayout: taps-major [K, kh*kw, Cout, Cin]; bias as [Cout, K];
    # attention gates flattened to 1-D for compact SMEM residency.
    w_r = jnp.transpose(weight, (0, 3, 4, 1, 2)).reshape(K, kh * kw, Cout, Cin).astype(jnp.float32)
    b_t = bias.T.astype(jnp.float32)
    att_flat = attention.reshape(B * K).astype(jnp.float32)
    taps = tuple((dy * dilation) * Wp + dx * dilation for dy in range(kh) for dx in range(kw))

    kern = functools.partial(_aggregation_kernel, taps=taps, num_kernels=K)
    cost = pl.CostEstimate(
        flops=int(2 * B * kh * kw * Cout * Cin * lout_pad + 2 * B * K * kh * kw * Cout * Cin),
        transcendentals=0,
        bytes_accessed=int(4 * (x_flat.size + w_r.size + b_t.size + att_flat.size
                                + B * Cout * lout_pad)),
    )

    out_flat = pl.pallas_call(
        kern,
        out_shape=jax.ShapeDtypeStruct((B, Cout, lout_pad), x.dtype),
        grid=(B,),
        in_specs=[
            pl.BlockSpec(memory_space=pltpu.MemorySpace.SMEM),               # attention gates (scalars)
            pl.BlockSpec((K, kh * kw, Cout, Cin), lambda b: (0, 0, 0, 0)),
            pl.BlockSpec((Cout, K), lambda b: (0, 0)),
            pl.BlockSpec((None, Cin, lin), lambda b: (b, 0, 0)),
        ],
        out_specs=pl.BlockSpec((None, Cout, lout_pad), lambda b: (b, 0, 0)),
        compiler_params=pltpu.CompilerParams(
            dimension_semantics=("parallel",),
            vmem_limit_bytes=64 * 1024 * 1024,
        ),
        cost_estimate=cost,
    )(att_flat, w_r, b_t, x_flat)

    # Strip the lane pad and the (kw-1) row-wrap columns.
    return out_flat[:, :, :lout].reshape(B, Cout, Ho, Wp)[:, :, :, :Wo]


def dynamic_kernel_aggregation(x, params, *, stride=1, padding=0, dilation=1, groups=1):
    attn = kernel_attention(x, params["attention"])
    return kernel_aggregation(x, attn, params["agg_weight"], params["agg_bias"],
                              stride=stride, padding=padding, dilation=dilation, groups=groups)


# ---------------------------------------------------------------------------
# Params + pure-JAX reference
# ---------------------------------------------------------------------------
def init_params(key, in_channels, out_channels, kernel_size, *, reduction=4, num_kernels=4):
    mid = in_channels // reduction if in_channels != 3 else num_kernels
    k1, k2, k3, k4, k5, k6, k7 = jax.random.split(key, 7)
    w1 = jax.random.normal(k1, (mid, in_channels), jnp.float32) * jnp.sqrt(2.0 / mid)
    w2 = jax.random.normal(k2, (num_kernels, mid), jnp.float32) * jnp.sqrt(2.0 / num_kernels)
    bound = math.sqrt(6.0 / (in_channels * kernel_size * kernel_size))
    agg_w = jax.random.uniform(k3, (num_kernels, out_channels, in_channels, kernel_size, kernel_size),
                               jnp.float32, -bound, bound)
    return {
        "attention": {
            "w1": w1,
            "bn_gamma": 1.0 + 0.1 * jax.random.normal(k4, (mid,), jnp.float32),
            "bn_beta": 0.1 * jax.random.normal(k5, (mid,), jnp.float32),
            "bn_mean": 0.1 * jax.random.normal(k6, (mid,), jnp.float32),
            "bn_var": 0.9 * jnp.ones((mid,), jnp.float32),
            "w2": w2,
            "b2": jnp.zeros((num_kernels,), jnp.float32),
        },
        "agg_weight": agg_w,
        "agg_bias": 0.1 * jax.random.normal(k7, (num_kernels, out_channels), jnp.float32),
    }


def reference_forward(x, params, *, stride=1, padding=0, dilation=1, groups=1):
    pa = params["attention"]
    pooled = jnp.mean(x, axis=(2, 3))
    h = pooled @ pa["w1"].T
    h = (h - pa["bn_mean"]) / jnp.sqrt(pa["bn_var"] + BN_EPS) * pa["bn_gamma"] + pa["bn_beta"]
    h = _gelu_exact(h)
    attn = jax.nn.sigmoid(h @ pa["w2"].T + pa["b2"])

    w = params["agg_weight"]
    bias = params["agg_bias"]
    aw = jnp.einsum("bk,kocyx->bocyx", attn, w)
    ab = attn @ bias
    outs = []
    for b in range(x.shape[0]):
        o = lax.conv_general_dilated(
            x[b:b + 1], aw[b], window_strides=(stride, stride),
            padding=[(padding, padding), (padding, padding)],
            rhs_dilation=(dilation, dilation),
            dimension_numbers=("NCHW", "OIHW", "NCHW"),
            feature_group_count=groups)
        outs.append(o + ab[b][None, :, None, None])
    return jnp.concatenate(outs, axis=0), attn


if __name__ == "__main__":
    key = jax.random.PRNGKey(0)
    kx, kp = jax.random.split(key)

    B, Cin, H, W = 2, 16, 16, 16
    Cout, ksz, pad, num_kernels = 8, 3, 1, 4

    x = jax.random.normal(kx, (B, Cin, H, W), jnp.float32)
    params = init_params(kp, Cin, Cout, ksz, reduction=4, num_kernels=num_kernels)

    out = dynamic_kernel_aggregation(x, params, stride=1, padding=pad, dilation=1, groups=1)
    out = jax.block_until_ready(out)

    ref_out, ref_attn = reference_forward(x, params, stride=1, padding=pad, dilation=1, groups=1)
    attn = kernel_attention(x, params["attention"])

    assert out.shape == (B, Cout, H, W), out.shape
    assert jnp.allclose(attn, ref_attn, atol=1e-5, rtol=1e-5), float(jnp.max(jnp.abs(attn - ref_attn)))
    assert jnp.allclose(out, ref_out, atol=1e-4, rtol=1e-4), float(jnp.max(jnp.abs(out - ref_out)))
    print("KERNEL_OK")
</pallas_src>

<mosaic_0001>
module attributes {stable_mosaic.version = 11 : i64} {
  func.func @_attention_kernel(%arg0: i32, %arg1: i32, %arg2: memref<1x16x256xf32, #tpu.memory_space<vmem>>, %arg3: memref<16x4xf32, #tpu.memory_space<vmem>>, %arg4: memref<1x4xf32, #tpu.memory_space<vmem>>, %arg5: memref<4x4xf32, #tpu.memory_space<vmem>>, %arg6: memref<1x4xf32, #tpu.memory_space<vmem>>, %arg7: memref<1x1x4xf32, #tpu.memory_space<vmem>>, %arg8: memref<1x16xf32, #tpu.memory_space<vmem>>) attributes {dimension_semantics = [#tpu.dimension_semantics<parallel>, #tpu.dimension_semantics<arbitrary>], iteration_bounds = array<i64: 2, 1>, scalar_prefetch = 0 : i64, scratch_operands = 1 : i64, tpu.core_type = #tpu.core_type<tc>, window_params = [{transform_indices = @transform_0, window_bounds = array<i64: 1, 16, 256>}, {pipeline_mode = #tpu.pipeline_mode<synchronous>, transform_indices = @transform_1, window_bounds = array<i64: 16, 4>}, {pipeline_mode = #tpu.pipeline_mode<synchronous>, transform_indices = @transform_2, window_bounds = array<i64: 1, 4>}, {pipeline_mode = #tpu.pipeline_mode<synchronous>, transform_indices = @transform_3, window_bounds = array<i64: 4, 4>}, {pipeline_mode = #tpu.pipeline_mode<synchronous>, transform_indices = @transform_4, window_bounds = array<i64: 1, 4>}, {transform_indices = @transform_5, window_bounds = array<i64: 1, 1, 4>}]} {
    %c0_i32 = arith.constant 0 : i32
    %0 = arith.cmpi eq, %arg1, %c0_i32 : i32
    %1 = arith.extui %0 : i1 to i32
    %c0_i32_0 = arith.constant 0 : i32
    %2 = arith.cmpi ne, %1, %c0_i32_0 : i32
    scf.if %2 {
      %cst_9 = arith.constant 0.000000e+00 : f32
      %11 = vector.broadcast %cst_9 : f32 to vector<1x16xf32>
      %c0_10 = arith.constant 0 : index
      %c0_11 = arith.constant 0 : index
      %12 = vector.load %arg8[%c0_10, %c0_11] : memref<1x16xf32, #tpu.memory_space<vmem>>, vector<1x16xf32>
      tpu.vector_store %arg8[%c0_10, %c0_11], %11 {strides = array<i32>} : memref<1x16xf32, #tpu.memory_space<vmem>>, vector<1x16xf32>,
    } else {
    }
    %c0 = arith.constant 0 : index
    %c0_1 = arith.constant 0 : index
    %3 = vector.load %arg8[%c0, %c0_1] : memref<1x16xf32, #tpu.memory_space<vmem>>, vector<1x16xf32>
    %c0_2 = arith.constant 0 : index
    %c0_3 = arith.constant 0 : index
    %c0_4 = arith.constant 0 : index
    %4 = vector.load %arg2[%c0_2, %c0_3, %c0_4] : memref<1x16x256xf32, #tpu.memory_space<vmem>>, vector<1x16x256xf32>
    %cst = arith.constant dense<0.000000e+00> : vector<1x16xf32>
    %5 = vector.multi_reduction <add>, %4, %cst [2] : vector<1x16x256xf32> to vector<1x16xf32>
    %6 = arith.addf %3, %5 : vector<1x16xf32>
    %c0_5 = arith.constant 0 : index
    %c0_6 = arith.constant 0 : index
    %7 = vector.load %arg8[%c0_5, %c0_6] : memref<1x16xf32, #tpu.memory_space<vmem>>, vector<1x16xf32>
    tpu.vector_store %arg8[%c0_5, %c0_6], %6 {strides = array<i32>} : memref<1x16xf32, #tpu.memory_space<vmem>>, vector<1x16xf32>,
    %c0_i32_7 = arith.constant 0 : i32
    %8 = arith.cmpi eq, %arg1, %c0_i32_7 : i32
    %9 = arith.extui %8 : i1 to i32
    %c0_i32_8 = arith.constant 0 : i32
    %10 = arith.cmpi ne, %9, %c0_i32_8 : i32
    scf.if %10 {
      %c0_9 = arith.constant 0 : index
      %c0_10 = arith.constant 0 : index
      %11 = vector.load %arg8[%c0_9, %c0_10] : memref<1x16xf32, #tpu.memory_space<vmem>>, vector<1x16xf32>
      %cst_11 = arith.constant 3.906250e-03 : f32
      %12 = vector.broadcast %cst_11 : f32 to vector<1x16xf32>
      %13 = arith.mulf %11, %12 : vector<1x16xf32>
      %c0_12 = arith.constant 0 : index
      %c0_13 = arith.constant 0 : index
      %14 = vector.load %arg3[%c0_12, %c0_13] : memref<16x4xf32, #tpu.memory_space<vmem>>, vector<16x4xf32>
      %cst_14 = arith.constant dense<0.000000e+00> : vector<1x4xf32>
      %15 = tpu.matmul %13, %14, %cst_14 {dimension_numbers = #tpu.dot_dimension_numbers<[1], [0], [0], [1], [0, 0, 1, 1], [], []>} : vector<1x16xf32>, vector<16x4xf32>, vector<1x4xf32> -> vector<1x4xf32>
      %c0_15 = arith.constant 0 : index
      %c0_16 = arith.constant 0 : index
      %16 = vector.load %arg4[%c0_15, %c0_16] : memref<1x4xf32, #tpu.memory_space<vmem>>, vector<1x4xf32>
      %17 = arith.addf %15, %16 : vector<1x4xf32>
      %cst_17 = arith.constant 5.000000e-01 : f32
      %18 = vector.broadcast %cst_17 : f32 to vector<1x4xf32>
      %19 = arith.mulf %18, %17 : vector<1x4xf32>
      %cst_18 = arith.constant 0.707106769 : f32
      %20 = vector.broadcast %cst_18 : f32 to vector<1x4xf32>
      %21 = arith.mulf %17, %20 : vector<1x4xf32>
      %22 = math.erf %21 : vector<1x4xf32>
      %cst_19 = arith.constant 1.000000e+00 : f32
      %23 = vector.broadcast %cst_19 : f32 to vector<1x4xf32>
      %24 = arith.addf %23, %22 : vector<1x4xf32>
      %25 = arith.mulf %19, %24 : vector<1x4xf32>
      %c0_20 = arith.constant 0 : index
      %c0_21 = arith.constant 0 : index
      %26 = vector.load %arg5[%c0_20, %c0_21] : memref<4x4xf32, #tpu.memory_space<vmem>>, vector<4x4xf32>
      %cst_22 = arith.constant dense<0.000000e+00> : vector<1x4xf32>
      %27 = tpu.matmul %25, %26, %cst_22 {dimension_numbers = #tpu.dot_dimension_numbers<[1], [0], [0], [1], [0, 0, 1, 1], [], []>} : vector<1x4xf32>, vector<4x4xf32>, vector<1x4xf32> -> vector<1x4xf32>
      %c0_23 = arith.constant 0 : index
      %c0_24 = arith.constant 0 : index
      %28 = vector.load %arg6[%c0_23, %c0_24] : memref<1x4xf32, #tpu.memory_space<vmem>>, vector<1x4xf32>
      %29 = arith.addf %27, %28 : vector<1x4xf32>
      %30 = arith.negf %29 : vector<1x4xf32>
      %31 = math.exp %30 : vector<1x4xf32>
      %cst_25 = arith.constant 1.000000e+00 : f32
      %32 = vector.broadcast %cst_25 : f32 to vector<1x4xf32>
      %33 = arith.addf %32, %31 : vector<1x4xf32>
      %34 = arith.divf %32, %33 : vector<1x4xf32>
      %35 = vector.shape_cast %34 : vector<1x4xf32> to vector<1x1x4xf32>
      %c0_26 = arith.constant 0 : index
      %c0_27 = arith.constant 0 : index
      %c0_28 = arith.constant 0 : index
      %36 = vector.load %arg7[%c0_26, %c0_27, %c0_28] : memref<1x1x4xf32, #tpu.memory_space<vmem>>, vector<1x1x4xf32>
      tpu.vector_store %arg7[%c0_26, %c0_27, %c0_28], %35 {strides = array<i32>} : memref<1x1x4xf32, #tpu.memory_space<vmem>>, vector<1x1x4xf32>,
    } else {
    }
    return
  }
  func.func @transform_0(%arg0: i32, %arg1: i32) -> (i32, i32, i32) {
    %c0_i32 = arith.constant 0 : i32
    %c0_i32_0 = arith.constant 0 : i32
    return %arg0, %c0_i32, %arg1 : i32, i32, i32
  }
  func.func @transform_1(%arg0: i32, %arg1: i32) -> (i32, i32) {
    %c0_i32 = arith.constant 0 : i32
    %c0_i32_0 = arith.constant 0 : i32
    %c0_i32_1 = arith.constant 0 : i32
    return %c0_i32, %c0_i32_0 : i32, i32
  }
  func.func @transform_2(%arg0: i32, %arg1: i32) -> (i32, i32) {
    %c0_i32 = arith.constant 0 : i32
    %c0_i32_0 = arith.constant 0 : i32
    %c0_i32_1 = arith.constant 0 : i32
    return %c0_i32, %c0_i32_0 : i32, i32
  }
  func.func @transform_3(%arg0: i32, %arg1: i32) -> (i32, i32) {
    %c0_i32 = arith.constant 0 : i32
    %c0_i32_0 = arith.constant 0 : i32
    %c0_i32_1 = arith.constant 0 : i32
    return %c0_i32, %c0_i32_0 : i32, i32
  }
  func.func @transform_4(%arg0: i32, %arg1: i32) -> (i32, i32) {
    %c0_i32 = arith.constant 0 : i32
    %c0_i32_0 = arith.constant 0 : i32
    %c0_i32_1 = arith.constant 0 : i32
    return %c0_i32, %c0_i32_0 : i32, i32
  }
  func.func @transform_5(%arg0: i32, %arg1: i32) -> (i32, i32, i32) {
    %c0_i32 = arith.constant 0 : i32
    %c0_i32_0 = arith.constant 0 : i32
    %c0_i32_1 = arith.constant 0 : i32
    return %arg0, %c0_i32, %c0_i32_0 : i32, i32, i32
  }
}

</mosaic_0001>

<bundles_post_ra>
// kernel: tpu_custom_call.1
= control target key start
LH: loop header
LB: loop body
LE: loop exit
PB: predicated region body
PF: predicated region fallthrough
CT: control target
= control target key end

     0   :  { %10 = vsyncpa [#allocation4], 0  ;;  %s932_s0 = inlined_call_operand.hbm [shape: f32[2,16,256], index: 0, kind: input, shape index: {}]   ;;  %s933_s1 = inlined_call_operand.vmem [shape: f32[16,4], index: 1, kind: input, shape index: {}]   ;;  %s934_s2 = inlined_call_operand.vmem [shape: f32[1,4], index: 2, kind: input, shape index: {}]   ;;  %s935_s3 = inlined_call_operand.vmem [shape: f32[4,4], index: 3, kind: input, shape index: {}]   ;;  %s936_s4 = inlined_call_operand.vmem [shape: f32[1,4], index: 4, kind: input, shape index: {}]   ;;  %s937_s5 = inlined_call_operand.hbm [shape: f32[2,1,4], index: 5, kind: output, shape index: {}]  }
   0x1   :  { %12 = vsyncpa [#allocation4 + $0x1], 0 }
   0x2   :  { %13 = vsyncpa [#allocation5], 0 }
   0x3   :  { %15 = vsyncpa [#allocation5 + $0x1], 0  ;;  %s794_s18 = smov 0   ;;  %s796_s19 = smov 0  }
   0x4   :  { %s798_s20 = smov 0   ;;  %s800_s21 = smov 0  }
   0x5   :  { %s802_s22 = smov 0   ;;  %s804_s23 = smov 0  }
   0x6 LB: > { %s555_s24 = sadd.s32 4294967295, %s758_s23   ;;  %s556_s25 = sadd.s32 4294967294, %s758_s23   ;;  %s758_s23 = sphi %s804_s23, %s21_s23   ;;  %s754_s22 = sphi %s802_s22, %s946_s22   ;;  %s750_s21 = sphi %s800_s21, %s945_s21   ;;  %s746_s20 = sphi %s798_s20, %s944_s20   ;;  %s742_s19 = sphi %s796_s19, %s943_s19   ;;  %s738_s18 = sphi %s794_s18, %s942_s18  }
   0x7   : > { %s33_s26 = sadd.s32 1, %s754_s22  ;;  %s42_s27 = sadd.s32 1, %s746_s20 }
   0x8   : > { %p35_p0 = scmp.ge.s32.totalorder %s33_s26, 2  ;;  %p49_p1 = scmp.ne.s32.totalorder %s746_s20, %s742_s19 }
   0x9   : > { %p50_p2 = scmp.eq.s32.totalorder %s758_s23, 0  ;;  %p55_p3 = scmp.ne.s32.totalorder %s742_s19, %s738_s18 }
   0xa   : > { %s948_s26 = smov (%p35_p0, %s33_s26), 0  ;;  %p56_p5 = scmp.eq.s32.totalorder %s555_s24, 0 }
   0xb   : > { %p835_p4 = por %p50_p2, %p49_p1  ;;  %s37_s29 = ssub.s32 %s754_s22, %s948_s26 }
   0xc   : > { %p163_p6 = scmp.eq.s32.totalorder %s555_s24, 1  ;;  %p40_p7 = scmp.eq.s32.totalorder %s37_s29, 0 }
   0xd   : > { %p841_p8 = por %p56_p5, %p55_p3  ;;  %p169_p10 = scmp.eq.s32.totalorder %s556_s25, 1 }
   0xe   : > { %p845_p9 = por %p163_p6, %p49_p1  ;;  %p558_p12 = scmp.ge.s32.totalorder %s758_s23, 2 }
   0xf   : > { %s850_s7 = scalar_select %p40_p7, %s746_s20, %s42_s27  }
  0x10   : > { %p852_p11 = por %p169_p10, %p55_p3  ;;  %p584_p13 = scmp.lt.s32.totalorder %s758_s23, 2 }
  0x11   : > { %s201_s9 = sand.u32 1, %s746_s20   ;;  %s571_s11 = sshll.u32 %s754_s22, 5 }
  0x12   : > { %s559_s10 = sshll.u32 %s201_s9, 5  ;;  %s212_s14 = scalar_lea.hbm %s932_s0, %s571_s11 }
  0x13   : > { %s205_s15 = scalar_lea.vmem [#allocation3], %s559_s10  ;;  %s213_s17 = sshll.u32 %s212_s14, 4  ;;  %s214_s17 = int_to_ptr.hbm [resolvable:$true] %s213_s17 }
  0x14   : > { %s215_s16 = sshll.u32 %s205_s15, 4  ;;  %p577_p0 = pnand %p584_p13, %p835_p4  ;;  %s216_s16 = int_to_ptr.vmem [resolvable:$true] %s215_s16 }
  0x15   : > { %p562_p1 = scmp.ge.s32.totalorder %s758_s23, 1  ;;  %s202_s24 = scalar_lea.sflag [#allocation4], %s201_s9 }
  0x16   : > { %s760_s25 = smov 256   ;;  %s761_s27 = smov 16  }
  0x17   : > { %579 = dma.hbm_to_vmem [thread:$0]  (!%p577_p0), %s214_s17, 512, %s216_s16, %s202_s24, %s760_s25, %s760_s25, %s761_s27  }
  0x18   : > { %p223_p2 = scmp.lt.s32.totalorder %s758_s23, 3 }
  0x1a   : > { %p224_p3 = pnand %p562_p1, %p223_p2 }
  0x1b   : > { %s868_s29 = sand.u32 (!%p224_p3), 1, %s742_s19  }
  0x1c   : > { %227 = sbr.rel (%p224_p3) target bundleno = 653 (0x28d), region = 40  ;;  %s563_s10 = sshll.u32 (!%p224_p3), %s868_s29, 5 }
  0x1d   : > { %s230_s11 = scalar_lea.sflag (!%p224_p3), [#allocation4], %s868_s29  ;;  %s233_s12 = scalar_lea.vmem (!%p224_p3), [#allocation3], %s563_s10 }
  0x21   : > { %729 = dma.done.wait (%p841_p8), %s230_s11, 512  }
  0x22   : > { %731 = vsyncadd (%p841_p8), %s230_s11, 4294966784  ;;  %v268_v0 = vld [vmem:[%s233_s12] sm:$0xff]  ;;  %v269_v1 = vld [vmem:[%s233_s12 + $0x8] sm:$0xff]  ;;  %v762_v6 = vmov 0   ;;  %vm265_vm0 = vcmask 122880   ;;  %v763_v27 = vmov 0.0   ;;  %v327_v31 = vlaneseq  ;;  %s474_s11 = scalar_lea.hbm %s937_s5, %s750_s21 }
  0x23   : > { %v272_v2 = vadd.f32 %v269_v1, %v268_v0  ;;  %v270_v3 = vld [vmem:[%s233_s12 + $0x10] sm:$0xff]  ;;  %v271_v4 = vld [vmem:[%s233_s12 + $0x18] sm:$0xff]  ;;  %638 = vset.pattern.permute.xlu1 %v762_v6  ;;  %639 = vset.pattern.permute.xlu0 %v762_v6  ;;  %266 = vst.msk [vmem:[#allocation2] sm:$0x1] %vm265_vm0, %v763_v27  ;;  %vm332_vm1 = vcmask 130112   ;;  %vm346_vm2 = vcmask 130048  }
  0x24   : > { %v275_v5 = vadd.f32 %v271_v4, %v270_v3  ;;  %v344_v28 = vld [vmem:[%s933_s1 + $0x8] sm:$0xff]  ;;  %v343_v29 = vld [vmem:[%s933_s1] sm:$0xff]  ;;  %v328_v32 = vand.u32 127, %v327_v31  ;;  %vm420_vm3 = vcmask 1043456   ;;  %vm416_vm8 = vcmask 31744   ;;  %s259_s12 = scalar_lea.vmem [#allocation6], %s868_s29 }
  0x25   : > { %273 = vadd.xlane.f32.xlu0 %v272_v2  ;;  %364 = vmatpush.msra.mxu0 %v344_v28  ;;  %v345_v42 = vld [vmem:[%s934_s2] sm:$0x1]  ;;  %s476_s28 = sshll.u32 %s259_s12, 4  ;;  %s478_s30 = sshll.u32 %s474_s11, 4  ;;  %vm463_vm12 = vcmask 24576   ;;  %s477_s28 = int_to_ptr.vmem [resolvable:$true] %s476_s28  ;;  %s479_s30 = int_to_ptr.hbm [resolvable:$true] %s478_s30 }
  0x26   : > { %v330_v33 = vadd.s32 4294967288, %v328_v32  ;;  %v414_v54 = vld [vmem:[%s935_s3] sm:$0xf]  ;;  %s466_s21 = scalar_lea.sflag [#allocation5], %s868_s29  ;;  %s690_s9 = sshra.s32 %s479_s30, 4  ;;  %s691_s9 = int_to_ptr.hbm [resolvable:$true] %s690_s9 }
  0x27   : > { %365 = vmatpush.msra.mxu0 %v343_v29  ;;  %566 = vmatpush.msk.msra.mxu1 %vm420_vm3, %v414_v54  ;;  %s692_s13 = scalar_lea.hbm %s691_s9, 1  ;;  %s696_s16 = scalar_lea.hbm %s937_s5, 2 }
  0x28   : > { %p693_p4 = scmp.ne.s32.totalorder %s691_s9, %s692_s13  ;;  %p697_p7 = scmp.lt.s32.totalorder %s691_s9, %s937_s5 }
  0x29   : > { %p698_p8 = scmp.lt.s32.totalorder %s696_s16, %s692_s13 }
  0x2a   : > { %v267_v36 = vld [vmem:[#allocation2] sm:$0x1]  ;;  %p694_p5 = pnand %p693_p4, %p845_p9 }
  0x2b   : > { %p699_p10 = por %p698_p8, %p697_p7 }
  0x2c   : > { %p695_p6 = pneg %p694_p5 }
  0x2d   : > { %276 = vadd.xlane.f32.xlu0 %v275_v5 }
  0x2e   : > { %p700_p13 = pnand %p699_p10, %p695_p6 }
  0x98   : > { %v274_v7 = vpop.xlane.xlu0 %273 }
  0x99   : > { %v280_v8 = vperm.slane %v274_v7, 0  ;;  %v281_v9 = vperm.slane %v274_v7, 1  ;;  %v282_v10 = vperm.slane %v274_v7, 2  ;;  %v283_v11 = vperm.slane %v274_v7, 3 }
  0x9a   : > { %v284_v12 = vperm.slane %v274_v7, 4  ;;  %v285_v13 = vperm.slane %v274_v7, 5  ;;  %v286_v14 = vperm.slane %v274_v7, 6  ;;  %v287_v15 = vperm.slane %v274_v7, 7 }
  0x9b   : > { %296 = vst [vmem:[#allocation1] ss:$9 sm:$0xff] %v280_v8 }
  0x9c   : > { %298 = vst [vmem:[#allocation1 + $0x1] ss:$9 sm:$0xff] %v281_v9 }
  0x9d   : > { %300 = vst [vmem:[#allocation1 + $0x2] ss:$9 sm:$0xff] %v282_v10 }
  0x9e   : > { %302 = vst [vmem:[#allocation1 + $0x3] ss:$9 sm:$0xff] %v283_v11 }
  0x9f   : > { %304 = vst [vmem:[#allocation1 + $0x4] ss:$9 sm:$0xff] %v284_v12 }
  0xa0   : > { %306 = vst [vmem:[#allocation1 + $0x5] ss:$9 sm:$0xff] %v285_v13  ;;  %v277_v16 = vpop.xlane.xlu0 %276 }
  0xa1   : > { %308 = vst [vmem:[#allocation1 + $0x6] ss:$9 sm:$0xff] %v286_v14  ;;  %v288_v17 = vperm.slane %v277_v16, 0  ;;  %v289_v18 = vperm.slane %v277_v16, 1  ;;  %v290_v19 = vperm.slane %v277_v16, 2  ;;  %v291_v20 = vperm.slane %v277_v16, 3 }
  0xa2   : > { %310 = vst [vmem:[#allocation1 + $0x7] ss:$9 sm:$0xff] %v287_v15  ;;  %v292_v22 = vperm.slane %v277_v16, 4  ;;  %v293_v23 = vperm.slane %v277_v16, 5  ;;  %v294_v24 = vperm.slane %v277_v16, 6  ;;  %v295_v25 = vperm.slane %v277_v16, 7 }
  0xa9   : > { %v311_v21 = vld [vmem:[#allocation1] sm:$0xff] }
  0xaa   : > { %322 = vperm.xlu1 %638, %v311_v21   ;;  %312 = vst [vmem:[#allocation1] ss:$9 sm:$0xff] %v288_v17  ;;  %v415_v21 = vld [vmem:[%s936_s4] sm:$0x1] }
  0xab   : > { %313 = vst [vmem:[#allocation1 + $0x1] ss:$9 sm:$0xff] %v289_v18 }
  0xac   : > { %314 = vst [vmem:[#allocation1 + $0x2] ss:$9 sm:$0xff] %v290_v19 }
  0xad   : > { %315 = vst [vmem:[#allocation1 + $0x3] ss:$9 sm:$0xff] %v291_v20 }
  0xae   : > { %316 = vst [vmem:[#allocation1 + $0x4] ss:$9 sm:$0xff] %v292_v22 }
  0xaf   : > { %317 = vst [vmem:[#allocation1 + $0x5] ss:$9 sm:$0xff] %v293_v23 }
  0xb0   : > { %318 = vst [vmem:[#allocation1 + $0x6] ss:$9 sm:$0xff] %v294_v24 }
  0xb1   : > { %319 = vst [vmem:[#allocation1 + $0x7] ss:$9 sm:$0xff] %v295_v25 }
  0xb8   : > { %v320_v26 = vld [vmem:[#allocation1] sm:$0xff] }
  0xb9   : > { %325 = vperm.xlu1 %638, %v320_v26  }
 0x11c   : > { %v323_v30 = vpop.permute.xlu1 %322 }
 0x11d   : > { %v329_v35 = vperm.slane %v323_v30, %v328_v32 }
 0x12b   : > { %v326_v34 = vpop.permute.xlu1 %325 }
 0x12c   : > { %v331_v37 = vperm.slane %v326_v34, %v330_v33 }
 0x12e   : > { %v333_v38 = vsel %vm332_vm1, %v331_v37, %v329_v35 }
 0x12f   : > { %v335_v39 = vadd.f32 %v333_v38, %v267_v36 }
 0x131   : > { %337 = vst.msk [vmem:[#allocation2] sm:$0x1] %vm265_vm0, %v335_v39 }
 0x138   : > { %v341_v40 = vld [vmem:[#allocation2] sm:$0x1] }
 0x139   : > { %v342_v41 = vmul.f32 0.00390625, %v341_v40 }
 0x13b   : > { %564 = vmatmul.msk.f32.vlgmr.msra.gmra.mxu0 %vm346_vm2, %v342_v41 }
 0x1b8   : > { %v367_v43 = vpop.f32.mrf.mxu0 }
 0x1b9   : > { %v368_v44 = vadd.f32 %v367_v43, %v345_v42 }
 0x1bb   : > { %v371_v45 = vmul.f32 0.70710677, %v368_v44  ;;  %v370_v18 = vmul.f32 0.5, %v368_v44 }
 0x1bd   : > { %v372_v46 = vmul.f32 %v371_v45, %v371_v45 }
 0x1bf   : > { %v373_v47 = vmin.f32 %v372_v46, 16.0 }
 0x1c1   : > { %v374_v48 = vmul.f32 2.1237322e-06, %v373_v47  ;;  %v385_v49 = vmul.f32 3.8918573e-05, %v373_v47 }
 0x1c3   : > { %v375_v50 = vadd.f32 0.00028619796, %v374_v48  ;;  %v386_v51 = vadd.f32 0.001143296, %v385_v49 }
 0x1c5   : > { %v376_v52 = vmul.f32 %v375_v50, %v373_v47  ;;  %v387_v53 = vmul.f32 %v386_v51, %v373_v47 }
 0x1c7   : > { %v388_v55 = vadd.f32 0.014752088, %v387_v53  ;;  %v377_v56 = vadd.f32 0.0036580483, %v376_v52 }
 0x1c9   : > { %v389_v57 = vmul.f32 %v388_v55, %v373_v47  ;;  %v378_v59 = vmul.f32 %v377_v56, %v373_v47 }
 0x1cb   : > { %v390_v58 = vadd.f32 0.112945676, %v389_v57  ;;  %v379_v62 = vadd.f32 0.05243302, %v378_v59 }
 0x1cd   : > { %v391_v60 = vmul.f32 %v390_v58, %v373_v47  ;;  %v380_v1 = vmul.f32 %v379_v62, %v373_v47 }
 0x1cf   : > { %v392_v61 = vadd.f32 0.4994258, %v391_v60  ;;  %v381_v2 = vadd.f32 0.18741608, %v380_v1 }
 0x1d1   : > { %v393_v63 = vmul.f32 %v392_v61, %v373_v47  ;;  %v382_v4 = vmul.f32 %v381_v2, %v373_v47 }
 0x1d3   : > { %v394_v0 = vadd.f32 1.0, %v393_v63  ;;  %v383_v8 = vadd.f32 1.1283791, %v382_v4 }
 0x1d5   : > { %640 = vrcp.f32 %v394_v0  ;;  %v406_v7 = vand.u32 2147483648, %v394_v0  ;;  %v404_v10 = vand.u32 2147483647, %v394_v0  ;;  %vm400_vm5 = vweird.f32 %v394_v0 }
 0x1d6   : > { %v384_v13 = vmul.f32 %v383_v8, %v371_v45 }
 0x1d7   : > { %v407_v12 = vor.u32 1.1754944e-38, %v406_v7  ;;  %vm405_vm7 = vcmp.eq.f32.partialorder %v404_v10, 8.507059e+37 }
 0x1db   : > { %v641_v3 = vpop.eup %640 }
 0x1dc   : > { %v396_v5 = vmul.f32 %v641_v3, %v394_v0  ;;  %vm401_vm4 = vweird.f32 %v641_v3 }
 0x1dd   : > { %vm402_vm6 = vmor %vm400_vm5, %vm401_vm4 }
 0x1de   : > { %v397_v6 = vsub.f32 1.0, %v396_v5 }
 0x1e0   : > { %v398_v9 = vmul.f32 %v641_v3, %v397_v6 }
 0x1e2   : > { %v399_v11 = vadd.f32 %v641_v3, %v398_v9 }
 0x1e4   : > { %v403_v14 = vsel %vm402_vm6, %v641_v3, %v399_v11 }
 0x1e5   : > { %v408_v15 = vsel %vm405_vm7, %v407_v12, %v403_v14 }
 0x1e6   : > { %v409_v16 = vmul.f32 %v408_v15, %v384_v13 }
 0x1e8   : > { %v565_v17 = vclamps-f32 %v409_v16, 1.0 }
 0x1ea   : > { %v412_v19 = vadd.f32 1.0, %v565_v17 }
 0x1ec   : > { %v413_v20 = vmul.f32 %v412_v19, %v370_v18 }
 0x1ee   : > { %567 = vmatmul.msk.f32.vlgmr.msra.gmra.mxu1 %vm416_vm8, %v413_v20 }
 0x26b   : > { %v441_v22 = vpop.f32.mrf.mxu1 }
 0x26c   : > { %v442_v23 = vadd.f32 %v441_v22, %v415_v21 }
 0x26e   : > { %v568_v24 = vmul.f32 -1.442695, %v442_v23 }
 0x270   : > { %642 = vpow2.f32 %v568_v24 }
 0x276   : > { %v643_v25 = vpop.eup %642 }
 0x277   : > { %v447_v26 = vadd.f32 1.0, %v643_v25 }
 0x279   : > { %644 = vrcp.f32 %v447_v26  ;;  %v459_v30 = vand.u32 2147483648, %v447_v26  ;;  %v457_v32 = vand.u32 2147483647, %v447_v26  ;;  %vm453_vm10 = vweird.f32 %v447_v26 }
 0x27b   : > { %v460_v34 = vor.u32 1.1754944e-38, %v459_v30  ;;  %vm458_vm13 = vcmp.eq.f32.partialorder %v457_v32, 8.507059e+37 }
 0x27f   : > { %v645_v27 = vpop.eup %644 }
 0x280   : > { %v449_v28 = vmul.f32 %v645_v27, %v447_v26  ;;  %vm454_vm9 = vweird.f32 %v645_v27 }
 0x281   : > { %vm455_vm11 = vmor %vm453_vm10, %vm454_vm9 }
 0x282   : > { %v450_v29 = vsub.f32 1.0, %v449_v28 }
 0x284   : > { %v451_v31 = vmul.f32 %v645_v27, %v450_v29 }
 0x286   : > { %v452_v33 = vadd.f32 %v645_v27, %v451_v31 }
 0x288   : > { %v456_v35 = vsel %vm455_vm11, %v645_v27, %v452_v33 }
 0x289   : > { %v461_v36 = vsel %vm458_vm13, %v460_v34, %v456_v35 }
 0x28a   : > { %464 = vst.msk [vmem:[%s259_s12] sm:$0x1] %vm463_vm12, %v461_v36 }
 0x28b   : > { %703 = shalt.err (!%p700_p13)
}
 0x28c   : > { %574 = dma.vmem_to_hbm [thread:$0]  (%p845_p9), %s477_s28, 16, %s479_s30, %s466_s21  }
 0x28d PF: > { %s490_s29 = sand.u32 1, %s738_s18   ;;  %p581_p0 = pnand %p558_p12, %p852_p11 }
 0x28e   : > { %s491_s25 = scalar_lea.sflag [#allocation5], %s490_s29 }
 0x28f   : > { %p582_p1 = pneg %p581_p0 }
 0x291   : > { %733 = dma.done.wait (%p582_p1), %s491_s25, 16  }
 0x292   : > { %735 = vsyncadd (%p582_p1), %s491_s25, 4294967280  ;;  %s21_s23 = sadd.s32 1, %s758_s23   ;;  %s942_s18 = smov %s742_s19 }
 0x293   : > { %p18_p2 = scmp.ge.s32.totalorder %s21_s23, 4   ;;  %s943_s19 = smov %s746_s20 }
 0x294   : > { %s944_s20 = smov %s850_s7  ;;  %s945_s21 = smov %s754_s22 }
 0x295   : > { %s946_s22 = smov %s948_s26  ;;  %20 = sbr.rel (!%p18_p2) target bundleno = 6 (0x6), region = 100 }
 0x29a   :  { %496 = vsyncpa [#allocation4], 1 }
 0x29b   :  { %498 = vsyncpa [#allocation4 + $0x1], 1 }
 0x29c   :  { %499 = vsyncpa [#allocation5], 1 }
 0x29d   :  { %501 = vsyncpa [#allocation5 + $0x1], 1 }

</bundles_post_ra>
